<compile_context>
chip_gen: v6e
topology: v6e:2x2x1
jax: 0.10.0
libtpu: 0.0.40
codegen_flags: <defaults>
</compile_context>

<pallas_src>
import functools

import jax
import jax.numpy as jnp
from jax.experimental import pallas as pl
from jax.experimental.pallas import tpu as pltpu

BN_EPS = 1e-5
LANE = 128


def _round_up(a, b):
    return (a + b - 1) // b * b


def _fcblock_kernel(x_ref, wt_ref, b_ref, gamma_ref, beta_ref, rnd_ref,
                    o_ref, acc_ref, *, dropout_rate, apply_dropout):
    """Grid = (n_tiles over Fout, k_tiles over Fin).

    Block = (B, tile_n) per Fout tile.  K (Fin) is the reduction axis: the f32
    VMEM accumulator is initialized with the broadcast bias at k == 0 and the
    ReLU / BatchNorm / Dropout epilogue runs at the last K step.  B is never
    tiled so BatchNorm uses full-batch statistics.
    """
    k = pl.program_id(1)

    @pl.when(k == 0)
    def _init():
        # Fold the Linear bias into the accumulator init (saves an epilogue add).
        acc_ref[...] = jnp.broadcast_to(b_ref[...], acc_ref.shape)

    # MXU matmul: bf16 (or native) inputs, f32 accumulate.
    x = x_ref[...].astype(wt_ref.dtype)
    acc_ref[...] += jnp.dot(x, wt_ref[...], preferred_element_type=jnp.float32)

    @pl.when(k == pl.num_programs(1) - 1)
    def _epilogue():
        y = jnp.maximum(acc_ref[...], 0.0)                      # ReLU

        # BatchNorm1d (train mode, biased batch variance), single-pass stats:
        # var = E[y^2] - E[y]^2  (one fewer cross-sublane reduction pass).
        inv_b = jnp.float32(1.0 / y.shape[0])
        mean = jnp.sum(y, axis=0, keepdims=True) * inv_b
        mean_sq = jnp.sum(y * y, axis=0, keepdims=True) * inv_b
        var = jnp.maximum(mean_sq - mean * mean, 0.0)
        y = (y - mean) * jax.lax.rsqrt(var + BN_EPS)
        y = y * gamma_ref[...] + beta_ref[...]

        # Inverted dropout: integer threshold on raw uint32 bits (no shift,
        # no int->float convert, no 2^-24 multiply).
        if apply_dropout:
            thresh = jnp.uint32(min(int(round(dropout_rate * 2.0 ** 32)),
                                    2 ** 32 - 1))
            keep = rnd_ref[...] >= thresh
            y = jnp.where(keep, y * jnp.float32(1.0 / (1.0 - dropout_rate)), 0.0)

        o_ref[...] = y.astype(o_ref.dtype)


def prepare_fcblock_params(weight, bias, gamma, beta, *, tile_n=256,
                           tile_k=512, matmul_dtype=jnp.bfloat16):
    """One-time parameter prep, hoisted out of the per-step forward path.

    weight: (Fout, Fin) in PyTorch nn.Linear layout.  Stored pre-transposed to
    (Fin, Fout), cast to the MXU input dtype, zero-padded so Fout is a
    lane-dense multiple of 128 and Fin is a multiple of the K tile.
    """
    Fout, Fin = weight.shape
    tn = min(_round_up(tile_n, LANE), _round_up(Fout, LANE))      # mult of 128
    tk = Fin if Fin <= tile_k else _round_up(tile_k, LANE)        # mult of 128
    Fout_p = _round_up(Fout, tn)
    Fin_p = _round_up(Fin, tk)

    wt = jnp.zeros((Fin_p, Fout_p), matmul_dtype)
    wt = wt.at[:Fin, :Fout].set(weight.T.astype(matmul_dtype))
    b = jnp.zeros((1, Fout_p), jnp.float32).at[0, :Fout].set(
        bias.astype(jnp.float32))
    g = jnp.zeros((1, Fout_p), jnp.float32).at[0, :Fout].set(
        gamma.astype(jnp.float32))
    be = jnp.zeros((1, Fout_p), jnp.float32).at[0, :Fout].set(
        beta.astype(jnp.float32))
    return dict(wt=wt, bias=b, gamma=g, beta=be, fin=Fin, fout=Fout,
                tile_n=tn, tile_k=tk)


def fcblock_forward(x, params, dropout_key, *, dropout_rate, training=True):
    """x: (B, Fin).  Returns (B, Fout) in x.dtype."""
    B, Fin = x.shape
    wt = params["wt"]
    Fin_p, Fout_p = wt.shape
    tn, tk = params["tile_n"], params["tile_k"]
    Fout = params["fout"]
    assert Fin == params["fin"], "input feature dim mismatch"

    if Fin_p != Fin:                                   # zero-pad the K axis
        x = jnp.pad(x, ((0, 0), (0, Fin_p - Fin)))

    apply_dropout = bool(training) and float(dropout_rate) > 0.0
    if apply_dropout:
        rnd = jax.random.bits(dropout_key, (B, Fout_p), dtype=jnp.uint32)
    else:
        rnd = jnp.zeros((B, Fout_p), jnp.uint32)

    n_n = Fout_p // tn
    n_k = Fin_p // tk

    kernel = functools.partial(_fcblock_kernel,
                               dropout_rate=float(dropout_rate),
                               apply_dropout=apply_dropout)

    # NOTE: B is deliberately not tiled (BatchNorm needs full-batch stats per
    # feature); for very large B the (B, tile_n) resident buffers must fit VMEM.
    out = pl.pallas_call(
        kernel,
        out_shape=jax.ShapeDtypeStruct((B, Fout_p), x.dtype),
        grid_spec=pltpu.PrefetchScalarGridSpec(
            num_scalar_prefetch=0,
            grid=(n_n, n_k),
            in_specs=[
                pl.BlockSpec((B, tk), lambda n, k: (0, k)),    # x
                pl.BlockSpec((tk, tn), lambda n, k: (k, n)),   # W^T (pre-prepped)
                pl.BlockSpec((1, tn), lambda n, k: (0, n)),    # bias
                pl.BlockSpec((1, tn), lambda n, k: (0, n)),    # gamma
                pl.BlockSpec((1, tn), lambda n, k: (0, n)),    # beta
                pl.BlockSpec((B, tn), lambda n, k: (0, n)),    # dropout bits
            ],
            out_specs=pl.BlockSpec((B, tn), lambda n, k: (0, n)),
            scratch_shapes=[pltpu.VMEM((B, tn), jnp.float32)],
        ),
        compiler_params=pltpu.CompilerParams(
            dimension_semantics=("parallel", "arbitrary"),
            vmem_limit_bytes=32 * 1024 * 1024,
        ),
    )(x, wt, params["bias"], params["gamma"], params["beta"], rnd)

    return out[:, :Fout]


if __name__ == "__main__":
    # Small shapes consistent with FCBlock(in_features=32, out_features=64, p=0.1)
    B, IN_F, OUT_F = 8, 32, 64
    DROPOUT_RATE = 0.1

    key = jax.random.PRNGKey(0)
    kx, kw, kb, kd = jax.random.split(key, 4)

    x = jax.random.normal(kx, (B, IN_F), dtype=jnp.float32)

    # Deterministic parameter init (PyTorch Linear default: U(-1/sqrt(in), 1/sqrt(in)))
    bound = 1.0 / (IN_F ** 0.5)
    weight = jax.random.uniform(kw, (OUT_F, IN_F), minval=-bound, maxval=bound,
                                dtype=jnp.float32)
    bias = jax.random.uniform(kb, (OUT_F,), minval=-bound, maxval=bound,
                              dtype=jnp.float32)
    gamma = jnp.ones((OUT_F,), dtype=jnp.float32)   # BatchNorm1d weight
    beta = jnp.zeros((OUT_F,), dtype=jnp.float32)   # BatchNorm1d bias

    params = prepare_fcblock_params(weight, bias, gamma, beta)
    out = fcblock_forward(x, params, kd, dropout_rate=DROPOUT_RATE,
                          training=True)
    jax.block_until_ready(out)

    assert out.shape == (B, OUT_F)
    assert bool(jnp.all(jnp.isfinite(out)))
    print("KERNEL_OK")
</pallas_src>

<mosaic_0001>
module attributes {stable_mosaic.version = 11 : i64} {
  func.func @_fcblock_kernel(%arg0: i32, %arg1: i32, %arg2: memref<8x32xf32, #tpu.memory_space<vmem>>, %arg3: memref<32x128xbf16, #tpu.memory_space<vmem>>, %arg4: memref<1x128xf32, #tpu.memory_space<vmem>>, %arg5: memref<1x128xf32, #tpu.memory_space<vmem>>, %arg6: memref<1x128xf32, #tpu.memory_space<vmem>>, %arg7: memref<8x128xi32, #tpu.memory_space<vmem>>, %arg8: memref<8x128xf32, #tpu.memory_space<vmem>>, %arg9: memref<8x128xf32, #tpu.memory_space<vmem>>) attributes {dimension_semantics = [#tpu.dimension_semantics<parallel>, #tpu.dimension_semantics<arbitrary>], iteration_bounds = array<i64: 1, 1>, scalar_prefetch = 0 : i64, scratch_operands = 1 : i64, tpu.core_type = #tpu.core_type<tc>, window_params = [{transform_indices = @transform_0, window_bounds = array<i64: 8, 32>}, {transform_indices = @transform_1, window_bounds = array<i64: 32, 128>}, {transform_indices = @transform_2, window_bounds = array<i64: 1, 128>}, {transform_indices = @transform_3, window_bounds = array<i64: 1, 128>}, {transform_indices = @transform_4, window_bounds = array<i64: 1, 128>}, {transform_indices = @transform_5, window_bounds = array<i64: 8, 128>}, {transform_indices = @transform_6, window_bounds = array<i64: 8, 128>}]} {
    %c0_i32 = arith.constant 0 : i32
    %0 = arith.cmpi eq, %arg1, %c0_i32 : i32
    %1 = arith.extui %0 : i1 to i32
    %c0_i32_0 = arith.constant 0 : i32
    %2 = arith.cmpi ne, %1, %c0_i32_0 : i32
    scf.if %2 {
      %c0_10 = arith.constant 0 : index
      %c0_11 = arith.constant 0 : index
      %13 = vector.load %arg4[%c0_10, %c0_11] : memref<1x128xf32, #tpu.memory_space<vmem>>, vector<1x128xf32>
      %14 = vector.shape_cast %13 : vector<1x128xf32> to vector<1x128xf32>
      %15 = vector.broadcast %14 : vector<1x128xf32> to vector<8x128xf32>
      %c0_12 = arith.constant 0 : index
      %c0_13 = arith.constant 0 : index
      %16 = vector.load %arg9[%c0_12, %c0_13] : memref<8x128xf32, #tpu.memory_space<vmem>>, vector<8x128xf32>
      tpu.vector_store %arg9[%c0_12, %c0_13], %15 {strides = array<i32>} : memref<8x128xf32, #tpu.memory_space<vmem>>, vector<8x128xf32>,
    } else {
    }
    %c0 = arith.constant 0 : index
    %c0_1 = arith.constant 0 : index
    %3 = vector.load %arg2[%c0, %c0_1] : memref<8x32xf32, #tpu.memory_space<vmem>>, vector<8x32xf32>
    %4 = arith.truncf %3 : vector<8x32xf32> to vector<8x32xbf16>
    %c0_2 = arith.constant 0 : index
    %c0_3 = arith.constant 0 : index
    %5 = vector.load %arg9[%c0_2, %c0_3] : memref<8x128xf32, #tpu.memory_space<vmem>>, vector<8x128xf32>
    %c0_4 = arith.constant 0 : index
    %c0_5 = arith.constant 0 : index
    %6 = vector.load %arg3[%c0_4, %c0_5] : memref<32x128xbf16, #tpu.memory_space<vmem>>, vector<32x128xbf16>
    %cst = arith.constant dense<0.000000e+00> : vector<8x128xf32>
    %7 = tpu.matmul %4, %6, %cst {dimension_numbers = #tpu.dot_dimension_numbers<[1], [0], [0], [1], [0, 0, 1, 1], [], []>} : vector<8x32xbf16>, vector<32x128xbf16>, vector<8x128xf32> -> vector<8x128xf32>
    %8 = arith.addf %5, %7 : vector<8x128xf32>
    %c0_6 = arith.constant 0 : index
    %c0_7 = arith.constant 0 : index
    %9 = vector.load %arg9[%c0_6, %c0_7] : memref<8x128xf32, #tpu.memory_space<vmem>>, vector<8x128xf32>
    tpu.vector_store %arg9[%c0_6, %c0_7], %8 {strides = array<i32>} : memref<8x128xf32, #tpu.memory_space<vmem>>, vector<8x128xf32>,
    %c0_i32_8 = arith.constant 0 : i32
    %10 = arith.cmpi eq, %arg1, %c0_i32_8 : i32
    %11 = arith.extui %10 : i1 to i32
    %c0_i32_9 = arith.constant 0 : i32
    %12 = arith.cmpi ne, %11, %c0_i32_9 : i32
    scf.if %12 {
      %c0_10 = arith.constant 0 : index
      %c0_11 = arith.constant 0 : index
      %13 = vector.load %arg9[%c0_10, %c0_11] : memref<8x128xf32, #tpu.memory_space<vmem>>, vector<8x128xf32>
      %cst_12 = arith.constant 0.000000e+00 : f32
      %14 = vector.broadcast %cst_12 : f32 to vector<8x128xf32>
      %15 = arith.maximumf %13, %14 : vector<8x128xf32>
      %cst_13 = arith.constant dense<0.000000e+00> : vector<128xf32>
      %16 = vector.multi_reduction <add>, %15, %cst_13 [0] : vector<8x128xf32> to vector<128xf32>
      %17 = vector.shape_cast %16 : vector<128xf32> to vector<1x128xf32>
      %cst_14 = arith.constant 1.250000e-01 : f32
      %18 = vector.broadcast %cst_14 : f32 to vector<1x128xf32>
      %19 = arith.mulf %17, %18 : vector<1x128xf32>
      %20 = arith.mulf %15, %15 : vector<8x128xf32>
      %cst_15 = arith.constant dense<0.000000e+00> : vector<128xf32>
      %21 = vector.multi_reduction <add>, %20, %cst_15 [0] : vector<8x128xf32> to vector<128xf32>
      %22 = vector.shape_cast %21 : vector<128xf32> to vector<1x128xf32>
      %cst_16 = arith.constant 1.250000e-01 : f32
      %23 = vector.broadcast %cst_16 : f32 to vector<1x128xf32>
      %24 = arith.mulf %22, %23 : vector<1x128xf32>
      %25 = arith.mulf %19, %19 : vector<1x128xf32>
      %26 = arith.subf %24, %25 : vector<1x128xf32>
      %cst_17 = arith.constant 0.000000e+00 : f32
      %27 = vector.broadcast %cst_17 : f32 to vector<1x128xf32>
      %28 = arith.maximumf %26, %27 : vector<1x128xf32>
      %29 = vector.broadcast %19 : vector<1x128xf32> to vector<8x128xf32>
      %30 = arith.subf %15, %29 : vector<8x128xf32>
      %cst_18 = arith.constant 9.99999974E-6 : f32
      %31 = vector.broadcast %cst_18 : f32 to vector<1x128xf32>
      %32 = arith.addf %28, %31 : vector<1x128xf32>
      %33 = math.rsqrt %32 : vector<1x128xf32>
      %34 = vector.broadcast %33 : vector<1x128xf32> to vector<8x128xf32>
      %35 = arith.mulf %30, %34 : vector<8x128xf32>
      %c0_19 = arith.constant 0 : index
      %c0_20 = arith.constant 0 : index
      %36 = vector.load %arg5[%c0_19, %c0_20] : memref<1x128xf32, #tpu.memory_space<vmem>>, vector<1x128xf32>
      %37 = vector.broadcast %36 : vector<1x128xf32> to vector<8x128xf32>
      %38 = arith.mulf %35, %37 : vector<8x128xf32>
      %c0_21 = arith.constant 0 : index
      %c0_22 = arith.constant 0 : index
      %39 = vector.load %arg6[%c0_21, %c0_22] : memref<1x128xf32, #tpu.memory_space<vmem>>, vector<1x128xf32>
      %40 = vector.broadcast %39 : vector<1x128xf32> to vector<8x128xf32>
      %41 = arith.addf %38, %40 : vector<8x128xf32>
      %c0_23 = arith.constant 0 : index
      %c0_24 = arith.constant 0 : index
      %42 = vector.load %arg7[%c0_23, %c0_24] : memref<8x128xi32, #tpu.memory_space<vmem>>, vector<8x128xi32>
      %c429496730_i32 = arith.constant 429496730 : i32
      %43 = vector.broadcast %c429496730_i32 : i32 to vector<8x128xi32>
      %44 = arith.cmpi uge, %42, %43 : vector<8x128xi32>
      %cst_25 = arith.constant 1.11111116 : f32
      %45 = vector.broadcast %cst_25 : f32 to vector<8x128xf32>
      %46 = arith.mulf %41, %45 : vector<8x128xf32>
      %cst_26 = arith.constant 0.000000e+00 : f32
      %47 = vector.broadcast %cst_26 : f32 to vector<8x128xf32>
      %48 = arith.select %44, %46, %47 : vector<8x128xi1>, vector<8x128xf32>
      %c0_27 = arith.constant 0 : index
      %c0_28 = arith.constant 0 : index
      %49 = vector.load %arg8[%c0_27, %c0_28] : memref<8x128xf32, #tpu.memory_space<vmem>>, vector<8x128xf32>
      tpu.vector_store %arg8[%c0_27, %c0_28], %48 {strides = array<i32>} : memref<8x128xf32, #tpu.memory_space<vmem>>, vector<8x128xf32>,
    } else {
    }
    return
  }
  func.func @transform_0(%arg0: i32, %arg1: i32) -> (i32, i32) {
    %c0_i32 = arith.constant 0 : i32
    %c0_i32_0 = arith.constant 0 : i32
    return %c0_i32, %arg1 : i32, i32
  }
  func.func @transform_1(%arg0: i32, %arg1: i32) -> (i32, i32) {
    %c0_i32 = arith.constant 0 : i32
    return %arg1, %arg0 : i32, i32
  }
  func.func @transform_2(%arg0: i32, %arg1: i32) -> (i32, i32) {
    %c0_i32 = arith.constant 0 : i32
    %c0_i32_0 = arith.constant 0 : i32
    return %c0_i32, %arg0 : i32, i32
  }
  func.func @transform_3(%arg0: i32, %arg1: i32) -> (i32, i32) {
    %c0_i32 = arith.constant 0 : i32
    %c0_i32_0 = arith.constant 0 : i32
    return %c0_i32, %arg0 : i32, i32
  }
  func.func @transform_4(%arg0: i32, %arg1: i32) -> (i32, i32) {
    %c0_i32 = arith.constant 0 : i32
    %c0_i32_0 = arith.constant 0 : i32
    return %c0_i32, %arg0 : i32, i32
  }
  func.func @transform_5(%arg0: i32, %arg1: i32) -> (i32, i32) {
    %c0_i32 = arith.constant 0 : i32
    %c0_i32_0 = arith.constant 0 : i32
    return %c0_i32, %arg0 : i32, i32
  }
  func.func @transform_6(%arg0: i32, %arg1: i32) -> (i32, i32) {
    %c0_i32 = arith.constant 0 : i32
    %c0_i32_0 = arith.constant 0 : i32
    return %c0_i32, %arg0 : i32, i32
  }
}

</mosaic_0001>

<bundles_post_ra>
// kernel: tpu_custom_call.1
= control target key start
LH: loop header
LB: loop body
LE: loop exit
PB: predicated region body
PF: predicated region fallthrough
CT: control target
= control target key end

     0   :  { %11 = vsyncpa [#allocation4], 0  ;;  %s419_s0 = inlined_call_operand.hbm [shape: f32[8,32], index: 0, kind: input, shape index: {}]   ;;  %s420_s1 = inlined_call_operand.hbm [shape: bf16[32,128], index: 1, kind: input, shape index: {}]   ;;  %s421_s2 = inlined_call_operand.vmem [shape: f32[1,128], index: 2, kind: input, shape index: {}]   ;;  %s422_s3 = inlined_call_operand.hbm [shape: f32[1,128], index: 3, kind: input, shape index: {}]   ;;  %s423_s4 = inlined_call_operand.hbm [shape: f32[1,128], index: 4, kind: input, shape index: {}]   ;;  %s424_s5 = inlined_call_operand.vmem [shape: u32[8,128], index: 5, kind: input, shape index: {}]   ;;  %s425_s6 = inlined_call_operand.hbm [shape: f32[8,128], index: 6, kind: output, shape index: {}]  }
   0x1   :  { %12 = vsyncpa [#allocation7], 0 }
   0x2   :  { %13 = vsyncpa [#allocation10], 0 }
   0x3   :  { %14 = vsyncpa [#allocation5], 0  ;;  %s354_s21 = smov [#allocation6]  }
   0x4   :  { %s30_s22 = sshll.u32 %s354_s21, 4  ;;  %s31_s22 = int_to_ptr.vmem [resolvable:$true] %s30_s22 }
   0x5   :  { %s254_s23 = scalar_lea.vmem %s31_s22, 256  ;;  %p259_p1 = scmp.lt.s32.totalorder %s31_s22, %s31_s22 }
   0x6   :  { %p255_p0 = scmp.ne.s32.totalorder %s31_s22, %s254_s23  ;;  %p260_p2 = scmp.lt.s32.totalorder %s254_s23, %s254_s23 }
   0x8   :  { %p261_p3 = por %p260_p2, %p259_p1 }
   0xa   :  { %p262_p4 = pnand %p261_p3, %p255_p0 }
   0xc   :  { %265 = shalt.err (!%p262_p4)
}
   0xd   :  { %s355_s24 = smov 64   ;;  %s356_s25 = smov 4  }
   0xe   :  { %36 = dma.hbm_to_vmem [thread:$0]  %s420_s1, 256, %s31_s22, [#allocation7], %s355_s24, %s355_s24, %s356_s25  }
   0xf   :  { %s357_s28 = smov [#allocation3]   ;;  %s358_s30 = smov [#allocation8]  }
  0x10   :  { %s21_s29 = sshll.u32 %s357_s28, 4  ;;  %s45_s7 = sshll.u32 %s358_s30, 4  ;;  %s22_s29 = int_to_ptr.vmem [resolvable:$true] %s21_s29  ;;  %s46_s7 = int_to_ptr.vmem [resolvable:$true] %s45_s7 }
  0x11   :  { %s274_s8 = scalar_lea.vmem %s22_s29, 128  ;;  %p279_p6 = scmp.lt.s32.totalorder %s22_s29, %s22_s29 }
  0x12   :  { %p275_p5 = scmp.ne.s32.totalorder %s22_s29, %s274_s8  ;;  %p280_p7 = scmp.lt.s32.totalorder %s274_s8, %s274_s8 }
  0x14   :  { %p281_p8 = por %p280_p7, %p279_p6 }
  0x16   :  { %p282_p9 = pnand %p281_p8, %p275_p5 }
  0x18   :  { %285 = shalt.err (!%p282_p9)
}
  0x19   :  { %24 = dma.hbm_to_vmem [thread:$0]  %s419_s0, 128, %s22_s29, [#allocation4]  }
  0x1a   :  { %s294_s11 = scalar_lea.vmem %s46_s7, 16  ;;  %s298_s1 = scalar_lea.vmem %s46_s7, 32 }
  0x1b   :  { %p295_p10 = scmp.ne.s32.totalorder %s46_s7, %s294_s11  ;;  %p299_p11 = scmp.lt.s32.totalorder %s46_s7, %s46_s7 }
  0x1c   :  { %p300_p12 = scmp.lt.s32.totalorder %s298_s1, %s294_s11 }
  0x1e   :  { %p301_p13 = por %p300_p12, %p299_p11 }
  0x20   :  { %p302_p0 = pnand %p301_p13, %p295_p10 }
  0x22   :  { %305 = shalt.err (!%p302_p0)
}
  0x23   :  { %48 = dma.hbm_to_vmem [thread:$0]  %s422_s3, 16, %s46_s7, [#allocation7]  }
  0x24   :  { %s359_s14 = smov [#allocation9]  }
  0x25   :  { %s55_s15 = sshll.u32 %s359_s14, 4  ;;  %s56_s15 = int_to_ptr.vmem [resolvable:$true] %s55_s15 }
  0x26   :  { %s314_s16 = scalar_lea.vmem %s56_s15, 16  ;;  %s318_s17 = scalar_lea.vmem %s56_s15, 32 }
  0x27   :  { %p315_p1 = scmp.ne.s32.totalorder %s56_s15, %s314_s16  ;;  %p319_p2 = scmp.lt.s32.totalorder %s56_s15, %s56_s15 }
  0x28   :  { %p320_p3 = scmp.lt.s32.totalorder %s318_s17, %s314_s16 }
  0x2a   :  { %p321_p4 = por %p320_p3, %p319_p2 }
  0x2c   :  { %p322_p5 = pnand %p321_p4, %p315_p1 }
  0x2e   :  { %325 = shalt.err (!%p322_p5)
}
  0x2f   :  { %58 = dma.hbm_to_vmem [thread:$0]  %s423_s4, 16, %s56_s15, [#allocation10]  }
  0x30   :  { %346 = dma.done.wait [#allocation4], 128  }
  0x31   :  { %347 = vsyncadd [#allocation4], 4294967168 }
  0x32   :  { %348 = dma.done.wait [#allocation7], 272  }
  0x33   :  { %349 = vsyncadd [#allocation7], 4294967024 }
  0x34   :  { %350 = dma.done.wait [#allocation10], 16  }
  0x35   :  { %351 = vsyncadd [#allocation10], 4294967280  ;;  %v360_v0 = vmov 0.0   ;;  %vm361_vm0 = vmmov 0   ;;  %v242_v1 = vld [vmem:[#allocation6 + $0x8] sm:$0xff]   ;;  %v243_v2 = vld [vmem:[#allocation6] sm:$0xff]  }
  0x36   :  { %225 = vmatprep.subr.bf16.mxu0 %v360_v0  ;;  %229 = vmatprep.mubr.msk.bf16.mxu0 %vm361_vm0, %v360_v0  ;;  %v86_v3 = vld [vmem:[#allocation3] sm:$0xff]  ;;  %vm105_vm1 = vcmask 261120   ;;  %v220_v33 = vld [vmem:[#allocation8] ss:$0 sm:$0xff]  ;;  %v221_v35 = vld [vmem:[#allocation9] ss:$0 sm:$0xff] }
  0x37   :  { %226 = vmatpush3.bf16.msra.mxu0 %v242_v1  ;;  %v87_v4 = vpack.c.bf16 %v86_v3, %v86_v3  ;;  %v216_v5 = vld [vmem:[%s421_s2] ss:$0 sm:$0xff]  ;;  %s362_s20 = smov [#allocation11]  }
  0x38   :  { %227 = vmatprep.subr.bf16.mxu0 %v360_v0  ;;  %v194_v37 = vld [vmem:[%s424_s5] sm:$0xff]  ;;  %s205_s21 = sshll.u32 %s362_s20, 4  ;;  %s206_s21 = int_to_ptr.vmem [resolvable:$true] %s205_s21 }
  0x39   :  { %vm195_vm2 = vcmp.ge.u32.totalorder %v194_v37, 429496730  ;;  %s326_s22 = scalar_lea.vmem %s206_s21, 128  ;;  %p331_p7 = scmp.lt.s32.totalorder %s206_s21, %s206_s21 }
  0x3a   :  { %p327_p6 = scmp.ne.s32.totalorder %s206_s21, %s326_s22  ;;  %p332_p8 = scmp.lt.s32.totalorder %s326_s22, %s326_s22 }
  0x3b   :  { %228 = vmatpush3.bf16.msra.mxu0 %v243_v2 }
  0x3c   :  { %p333_p9 = por %p332_p8, %p331_p7 }
  0x3e   :  { %230 = vmatmul.mubr.msk.bf16.vlgmr.msra.gmra.mxu0 %vm105_vm1, %v87_v4  ;;  %p334_p10 = pnand %p333_p9, %p327_p6 }
  0xfe   :  { %v143_v6 = vpop.f32.mrf.mxu0 }
  0xff   :  { %v149_v7 = vadd.f32 %v216_v5, %v143_v6 }
 0x100   :  { %v231_v8 = vpop.f32.mrf.mxu0 }
 0x101   :  { %v155_v9 = vmax.f32 %v149_v7, 0.0 }
 0x102   :  { %v146_v10 = vpop.f32.mrf.mxu0 }
 0x103   :  { %v156_v11 = vrot.slane %v155_v9, 4  ;;  %v163_v12 = vmul.f32 %v155_v9, %v155_v9 }
 0x104   :  { %v232_v13 = vpop.f32.mrf.mxu0 }
 0x105   :  { %v157_v14 = vadd.f32 %v156_v11, %v155_v9  ;;  %v164_v15 = vrot.slane %v163_v12, 4 }
 0x107   :  { %v158_v16 = vrot.slane %v157_v14, 2  ;;  %v165_v17 = vadd.f32 %v164_v15, %v163_v12 }
 0x109   :  { %v159_v18 = vadd.f32 %v158_v16, %v157_v14  ;;  %v166_v19 = vrot.slane %v165_v17, 2 }
 0x10b   :  { %v160_v20 = vrot.slane %v159_v18, 1  ;;  %v167_v21 = vadd.f32 %v166_v19, %v165_v17 }
 0x10d   :  { %v161_v22 = vadd.f32 %v160_v20, %v159_v18  ;;  %v168_v23 = vrot.slane %v167_v21, 1 }
 0x10f   :  { %v162_v24 = vmul.f32 0.125, %v161_v22  ;;  %v169_v25 = vadd.f32 %v168_v23, %v167_v21 }
 0x111   :  { %v170_v26 = vmul.f32 0.125, %v169_v25  ;;  %v171_v27 = vmul.f32 %v162_v24, %v162_v24  ;;  %v174_v31 = vsub.f32 %v155_v9, %v162_v24 }
 0x113   :  { %v172_v28 = vsub.f32 %v170_v26, %v171_v27 }
 0x115   :  { %v173_v29 = vmax.f32 %v172_v28, 0.0 }
 0x117   :  { %v175_v30 = vadd.f32 1e-05, %v173_v29 }
 0x119   :  { %244 = vrsqrt.f32 %v175_v30 }
 0x126   :  { %v245_v32 = vpop.eup %244 }
 0x127   :  { %v177_v34 = vmul.f32 %v245_v32, %v174_v31 }
 0x129   :  { %v185_v36 = vmul.f32 %v220_v33, %v177_v34 }
 0x12b   :  { %v193_v38 = vadd.f32 %v221_v35, %v185_v36 }
 0x12d   :  { %v196_v39 = vmul.f32 1.1111112, %v193_v38 }
 0x12f   :  { %v197_v40 = vsel %vm195_vm2, %v196_v39, 0.0 }
 0x130   :  { %198 = vst [vmem:[#allocation11] sm:$0xff] %v197_v40 }
 0x131   :  { %337 = shalt.err (!%p334_p10)
}
 0x132   :  { %208 = dma.vmem_to_hbm [thread:$0]  %s206_s21, 128, %s425_s6, [#allocation5]  }
 0x133   :  { %352 = dma.done.wait [#allocation5], 128  }
 0x134   :  { %353 = vsyncadd [#allocation5], 4294967168 }
 0x135   :  { %212 = vsyncpa [#allocation4], 1 }
 0x136   :  { %213 = vsyncpa [#allocation7], 1 }
 0x137   :  { %214 = vsyncpa [#allocation10], 1 }
 0x138   :  { %215 = vsyncpa [#allocation5], 1 }

</bundles_post_ra>
